<compile_context>
chip_gen: v7x
topology: tpu7x:2x2x1
jax: 0.10.0
libtpu: 0.0.40
codegen_flags: <defaults>
</compile_context>

<pallas_src>
import functools

import jax
import jax.numpy as jnp
from jax.experimental import pallas as pl
from jax.experimental.pallas import tpu as pltpu


_VMEM_BUDGET = 12 << 20   # target bytes for (double-buffered) blocks + scratch
_LANE = 128


def _cdiv(a, b):
    return -(-a // b)


def _round_up(a, b):
    return _cdiv(a, b) * b


# --------------------------------------------------------------------------
# Kernels
# --------------------------------------------------------------------------
def _global_avgmax_kernel(x_ref, o_ref, sum_acc, max_acc, *,
                          window, block_w, need_mask, inv_window):
    """Global pool (output_size == 1).

    x_ref: (R, block_w) slice of the flattened (rows, H*W) input.
    o_ref: (R, 1).  Window may be split across grid axis 1 (accumulators).
    """
    k = pl.program_id(1)

    @pl.when(k == 0)
    def _init():
        sum_acc[...] = jnp.zeros_like(sum_acc)
        max_acc[...] = jnp.full_like(max_acc, -jnp.inf)

    # Single load feeds both the sum and the max reduction (fused pass).
    x = x_ref[...].astype(jnp.float32)
    if need_mask:  # ragged last window block: mask out-of-window lanes
        lane = jax.lax.broadcasted_iota(jnp.int32, x.shape, 1)
        valid = (k * block_w + lane) < window
        x_sum = jnp.where(valid, x, 0.0)
        x_max = jnp.where(valid, x, -jnp.inf)
    else:
        x_sum = x
        x_max = x

    sum_acc[...] += jnp.sum(x_sum, axis=-1, keepdims=True)
    max_acc[...] = jnp.maximum(max_acc[...],
                               jnp.max(x_max, axis=-1, keepdims=True))

    @pl.when(k == pl.num_programs(1) - 1)
    def _finalize():
        o_ref[...] = (0.5 * (sum_acc[...] * inv_window
                             + max_acc[...])).astype(o_ref.dtype)


def _windowed_avgmax_kernel(x_ref, o_ref, *, inv_window):
    """output_size > 1 (evenly divisible).

    x_ref: (R, kh, OW, kw) -- a free reshape of NCHW, no HBM transpose.
    o_ref: (R, OW) -- lane-denser than a width-1 output column.
    """
    x = x_ref[...].astype(jnp.float32)       # single load feeds sum & max
    s = jnp.sum(jnp.sum(x, axis=3), axis=1)  # reduce kw (lanes), then kh
    m = jnp.max(jnp.max(x, axis=3), axis=1)
    o_ref[...] = (0.5 * (s * inv_window + m)).astype(o_ref.dtype)


# --------------------------------------------------------------------------
# Wrapper
# --------------------------------------------------------------------------
@functools.partial(jax.jit, static_argnames=("output_size",))
def adaptive_avgmax_pool2d(x, output_size=1):
    """x: (N, C, H, W) NCHW.  Returns (N, C, OH, OW) in x.dtype."""
    if isinstance(output_size, int):
        oh, ow = output_size, output_size
    else:
        oh, ow = output_size

    n, c, h, w = x.shape
    if h % oh != 0 or w % ow != 0:
        # TODO(synk): general adaptive pooling (overlapping bins) is not implemented.
        raise NotImplementedError("output_size must evenly divide (H, W)")

    kh, kw = h // oh, w // ow
    window = kh * kw
    inv_window = 1.0 / float(window)
    itemsize = jnp.dtype(x.dtype).itemsize
    sub = 8 * max(1, 4 // itemsize)          # sublane multiple for this dtype

    compiler_kwargs = dict(vmem_limit_bytes=32 << 20)  # safe on v5e/v6e/v7x

    if oh == 1 and ow == 1:
        # ---------------- global pool: free reshape, window on the lane axis
        rows = n * c
        x2 = x.reshape(rows, window)

        # padded VMEM bytes per block row (double-buffered in/out + scratch)
        out_row = 2 * _LANE * itemsize + 2 * _LANE * 4
        in_row_full = 2 * _round_up(window, _LANE) * itemsize
        if sub * (in_row_full + out_row) <= _VMEM_BUDGET:
            block_w = window                 # whole window fits one block
        else:
            # split the window over a second grid axis; keep sub-row blocks
            bw = (_VMEM_BUDGET // sub - out_row) // (2 * itemsize)
            block_w = max(_LANE, (bw // _LANE) * _LANE)
        need_mask = (window % block_w) != 0
        num_w_blocks = _cdiv(window, block_w)

        per_row = 2 * _round_up(block_w, _LANE) * itemsize + out_row
        block_rows = max(sub, (_VMEM_BUDGET // per_row) // sub * sub)
        if rows >= 2 * sub:
            # keep >= 2 row blocks so "parallel" can shard across v7x's 2 TCs
            block_rows = min(block_rows, _round_up(_cdiv(rows, 2), sub))
        if block_rows >= rows:
            block_rows = rows
        num_r_blocks = _cdiv(rows, block_rows)

        kernel = functools.partial(
            _global_avgmax_kernel, window=window, block_w=block_w,
            need_mask=need_mask, inv_window=inv_window)

        out = pl.pallas_call(
            kernel,
            out_shape=jax.ShapeDtypeStruct((rows, 1), x.dtype),
            grid_spec=pltpu.PrefetchScalarGridSpec(
                num_scalar_prefetch=0,
                grid=(num_r_blocks, num_w_blocks),
                in_specs=[pl.BlockSpec((block_rows, block_w),
                                       lambda i, k: (i, k))],
                out_specs=pl.BlockSpec((block_rows, 1),
                                       lambda i, k: (i, 0)),
                scratch_shapes=[pltpu.VMEM((block_rows, 1), jnp.float32),
                                pltpu.VMEM((block_rows, 1), jnp.float32)]),
            compiler_params=pltpu.CompilerParams(
                dimension_semantics=("parallel", "arbitrary"),
                **compiler_kwargs),
        )(x2)
        return out.reshape(n, c, 1, 1)

    # ---------------- output_size > 1: free reshape, no HBM transpose
    rows = n * c * oh
    x4 = x.reshape(rows, kh, ow, kw)

    # padded VMEM bytes per block row (last two dims tile-pad to (sub, 128))
    in_row = 2 * kh * _round_up(ow, sub) * _round_up(kw, _LANE) * itemsize
    out_row = 2 * _round_up(ow, _LANE) * itemsize
    per_row = in_row + out_row
    # TODO(synk): split kh over a second grid axis if a single row's padded
    # window ever exceeds the VMEM budget (huge images with small output_size).
    block_rows = max(sub, (_VMEM_BUDGET // per_row) // sub * sub)
    if rows >= 2 * sub:
        block_rows = min(block_rows, _round_up(_cdiv(rows, 2), sub))
    if block_rows >= rows:
        block_rows = rows
    num_r_blocks = _cdiv(rows, block_rows)

    kernel = functools.partial(_windowed_avgmax_kernel, inv_window=inv_window)
    out = pl.pallas_call(
        kernel,
        out_shape=jax.ShapeDtypeStruct((rows, ow), x.dtype),
        grid_spec=pltpu.PrefetchScalarGridSpec(
            num_scalar_prefetch=0,
            grid=(num_r_blocks,),
            in_specs=[pl.BlockSpec((block_rows, kh, ow, kw),
                                   lambda i: (i, 0, 0, 0))],
            out_specs=pl.BlockSpec((block_rows, ow), lambda i: (i, 0))),
        compiler_params=pltpu.CompilerParams(
            dimension_semantics=("parallel",),
            **compiler_kwargs),
    )(x4)
    return out.reshape(n, c, oh, ow)


class AdaptiveAvgMaxPool2d:
    """Combined average-max pooling layer (Pallas TPU version)."""

    def __init__(self, output_size=1):
        self.output_size = output_size

    def __call__(self, x):
        return adaptive_avgmax_pool2d(x, self.output_size)


# --------------------------------------------------------------------------
# Reference + self-test
# --------------------------------------------------------------------------
def _reference(x, output_size=1):
    if isinstance(output_size, int):
        oh, ow = output_size, output_size
    else:
        oh, ow = output_size
    n, c, h, w = x.shape
    kh, kw = h // oh, w // ow
    x2 = x.reshape(n, c, oh, kh, ow, kw).transpose(0, 1, 2, 4, 3, 5)
    x2 = x2.reshape(n, c, oh, ow, kh * kw)
    return 0.5 * (x2.mean(-1) + x2.max(-1))


if __name__ == "__main__":
    key = jax.random.PRNGKey(0)
    x = jax.random.normal(key, (2, 4, 16, 16), dtype=jnp.float32)

    # default global pool
    pool = AdaptiveAvgMaxPool2d(output_size=1)
    y = pool(x)
    jax.block_until_ready(y)
    y_ref = _reference(x, 1)
    assert y.shape == (2, 4, 1, 1), y.shape
    assert jnp.allclose(y, y_ref, atol=1e-5, rtol=1e-5), (
        f"max err {jnp.max(jnp.abs(y - y_ref))}")

    # non-trivial output_size that divides the input (no-transpose path)
    y2 = adaptive_avgmax_pool2d(x, 2)
    jax.block_until_ready(y2)
    assert y2.shape == (2, 4, 2, 2), y2.shape
    assert jnp.allclose(y2, _reference(x, 2), atol=1e-5, rtol=1e-5), (
        f"max err {jnp.max(jnp.abs(y2 - _reference(x, 2)))}")

    # bf16 exercises the dtype-aware block sizing
    xb = x.astype(jnp.bfloat16)
    yb = adaptive_avgmax_pool2d(xb, 1)
    jax.block_until_ready(yb)
    assert yb.shape == (2, 4, 1, 1), yb.shape
    assert jnp.allclose(yb.astype(jnp.float32), y_ref, atol=3e-2, rtol=3e-2), (
        f"max err {jnp.max(jnp.abs(yb.astype(jnp.float32) - y_ref))}")

    print("KERNEL_OK")
</pallas_src>

<mosaic_0001>
module attributes {stable_mosaic.version = 11 : i64} {
  func.func @_global_avgmax_kernel(%arg0: i32, %arg1: i32, %arg2: memref<8x256xf32, #tpu.memory_space<vmem>>, %arg3: memref<8x1xf32, #tpu.memory_space<vmem>>, %arg4: memref<8x1xf32, #tpu.memory_space<vmem>>, %arg5: memref<8x1xf32, #tpu.memory_space<vmem>>) attributes {dimension_semantics = [#tpu.dimension_semantics<parallel>, #tpu.dimension_semantics<arbitrary>], iteration_bounds = array<i64: 1, 1>, scalar_prefetch = 0 : i64, scratch_operands = 2 : i64, tpu.core_type = #tpu.core_type<tc>, window_params = [{transform_indices = @transform_0, window_bounds = array<i64: 8, 256>}, {transform_indices = @transform_1, window_bounds = array<i64: 8, 1>}]} {
    %c0_i32 = arith.constant 0 : i32
    %0 = arith.cmpi eq, %arg1, %c0_i32 : i32
    %1 = arith.extui %0 : i1 to i32
    %c0_i32_0 = arith.constant 0 : i32
    %2 = arith.cmpi ne, %1, %c0_i32_0 : i32
    scf.if %2 {
      %cst_13 = arith.constant 0.000000e+00 : f32
      %17 = vector.broadcast %cst_13 : f32 to vector<8x1xf32>
      %c0_14 = arith.constant 0 : index
      %c0_15 = arith.constant 0 : index
      %18 = vector.load %arg4[%c0_14, %c0_15] : memref<8x1xf32, #tpu.memory_space<vmem>>, vector<8x1xf32>
      tpu.vector_store %arg4[%c0_14, %c0_15], %17 {strides = array<i32>} : memref<8x1xf32, #tpu.memory_space<vmem>>, vector<8x1xf32>,
      %cst_16 = arith.constant 0xFF800000 : f32
      %19 = vector.broadcast %cst_16 : f32 to vector<8x1xf32>
      %c0_17 = arith.constant 0 : index
      %c0_18 = arith.constant 0 : index
      %20 = vector.load %arg5[%c0_17, %c0_18] : memref<8x1xf32, #tpu.memory_space<vmem>>, vector<8x1xf32>
      tpu.vector_store %arg5[%c0_17, %c0_18], %19 {strides = array<i32>} : memref<8x1xf32, #tpu.memory_space<vmem>>, vector<8x1xf32>,
    } else {
    }
    %c0 = arith.constant 0 : index
    %c0_1 = arith.constant 0 : index
    %3 = vector.load %arg2[%c0, %c0_1] : memref<8x256xf32, #tpu.memory_space<vmem>>, vector<8x256xf32>
    %c0_2 = arith.constant 0 : index
    %c0_3 = arith.constant 0 : index
    %4 = vector.load %arg4[%c0_2, %c0_3] : memref<8x1xf32, #tpu.memory_space<vmem>>, vector<8x1xf32>
    %cst = arith.constant dense<0.000000e+00> : vector<8xf32>
    %5 = vector.multi_reduction <add>, %3, %cst [1] : vector<8x256xf32> to vector<8xf32>
    %6 = vector.shape_cast %5 : vector<8xf32> to vector<8x1xf32>
    %7 = arith.addf %4, %6 : vector<8x1xf32>
    %c0_4 = arith.constant 0 : index
    %c0_5 = arith.constant 0 : index
    %8 = vector.load %arg4[%c0_4, %c0_5] : memref<8x1xf32, #tpu.memory_space<vmem>>, vector<8x1xf32>
    tpu.vector_store %arg4[%c0_4, %c0_5], %7 {strides = array<i32>} : memref<8x1xf32, #tpu.memory_space<vmem>>, vector<8x1xf32>,
    %c0_6 = arith.constant 0 : index
    %c0_7 = arith.constant 0 : index
    %9 = vector.load %arg5[%c0_6, %c0_7] : memref<8x1xf32, #tpu.memory_space<vmem>>, vector<8x1xf32>
    %cst_8 = arith.constant dense<0xFF800000> : vector<8xf32>
    %10 = vector.multi_reduction <maximumf>, %3, %cst_8 [1] : vector<8x256xf32> to vector<8xf32>
    %11 = vector.shape_cast %10 : vector<8xf32> to vector<8x1xf32>
    %12 = arith.maximumf %9, %11 : vector<8x1xf32>
    %c0_9 = arith.constant 0 : index
    %c0_10 = arith.constant 0 : index
    %13 = vector.load %arg5[%c0_9, %c0_10] : memref<8x1xf32, #tpu.memory_space<vmem>>, vector<8x1xf32>
    tpu.vector_store %arg5[%c0_9, %c0_10], %12 {strides = array<i32>} : memref<8x1xf32, #tpu.memory_space<vmem>>, vector<8x1xf32>,
    %c0_i32_11 = arith.constant 0 : i32
    %14 = arith.cmpi eq, %arg1, %c0_i32_11 : i32
    %15 = arith.extui %14 : i1 to i32
    %c0_i32_12 = arith.constant 0 : i32
    %16 = arith.cmpi ne, %15, %c0_i32_12 : i32
    scf.if %16 {
      %c0_13 = arith.constant 0 : index
      %c0_14 = arith.constant 0 : index
      %17 = vector.load %arg4[%c0_13, %c0_14] : memref<8x1xf32, #tpu.memory_space<vmem>>, vector<8x1xf32>
      %cst_15 = arith.constant 3.906250e-03 : f32
      %18 = vector.broadcast %cst_15 : f32 to vector<8x1xf32>
      %19 = arith.mulf %17, %18 : vector<8x1xf32>
      %c0_16 = arith.constant 0 : index
      %c0_17 = arith.constant 0 : index
      %20 = vector.load %arg5[%c0_16, %c0_17] : memref<8x1xf32, #tpu.memory_space<vmem>>, vector<8x1xf32>
      %21 = arith.addf %19, %20 : vector<8x1xf32>
      %cst_18 = arith.constant 5.000000e-01 : f32
      %22 = vector.broadcast %cst_18 : f32 to vector<8x1xf32>
      %23 = arith.mulf %22, %21 : vector<8x1xf32>
      %c0_19 = arith.constant 0 : index
      %c0_20 = arith.constant 0 : index
      %24 = vector.load %arg3[%c0_19, %c0_20] : memref<8x1xf32, #tpu.memory_space<vmem>>, vector<8x1xf32>
      tpu.vector_store %arg3[%c0_19, %c0_20], %23 {strides = array<i32>} : memref<8x1xf32, #tpu.memory_space<vmem>>, vector<8x1xf32>,
    } else {
    }
    return
  }
  func.func @transform_0(%arg0: i32, %arg1: i32) -> (i32, i32) {
    %c0_i32 = arith.constant 0 : i32
    return %arg0, %arg1 : i32, i32
  }
  func.func @transform_1(%arg0: i32, %arg1: i32) -> (i32, i32) {
    %c0_i32 = arith.constant 0 : i32
    %c0_i32_0 = arith.constant 0 : i32
    return %arg0, %c0_i32 : i32, i32
  }
}

</mosaic_0001>

<bundles_post_ra>
// kernel: adaptive_avgmax_pool2d.1
= control target key start
LH: loop header
LB: loop body
LE: loop exit
PB: predicated region body
PF: predicated region fallthrough
CT: control target
= control target key end

     0   :  { %vm12_vm0 = vcmask 7168   ;;  %v45_v2 = vmov 0.0   ;;  %v46_v5 = vmov -inf   ;;  %s71_s0 = inlined_call_operand.vmem [shape: f32[8,256], index: 0, kind: input, shape index: {}]   ;;  %s72_s1 = inlined_call_operand.vmem [shape: f32[8,1], index: 1, kind: output, shape index: {}]  }
   0x1   :  { %v15_v0 = vld [vmem:[%s71_s0] sm:$0xff]  ;;  %v16_v1 = vld [vmem:[%s71_s0 + $0x8] sm:$0xff]  ;;  %13 = vst.msk [vmem:[#allocation2] sm:$0xff] %vm12_vm0, %v45_v2  ;;  %14 = vst.msk [vmem:[#allocation3] sm:$0xff] %vm12_vm0, %v46_v5 }
   0x2   :  { %v18_v3 = vadd.f32 %v16_v1, %v15_v0  ;;  %v25_v4 = vmax.f32 %v15_v0, %v16_v1 }
   0x4   :  { %19 = vadd.xlane.f32.xlu0 %v18_v3 }
   0x8   :  { %26 = vmax.xlane.f32.xlu0 %v25_v4  ;;  %v17_v6 = vld [vmem:[#allocation2] sm:$0xff]  ;;  %v24_v9 = vld [vmem:[#allocation3] sm:$0xff] }
  0x91   :  { %v20_v7 = vpop.xlane.xlu0 %19 }
  0x92   :  { %v21_v8 = vadd.f32 %v20_v7, %v17_v6 }
  0x94   :  { %23 = vst.msk [vmem:[#allocation2] sm:$0xff] %vm12_vm0, %v21_v8 }
  0x95   :  { %v27_v10 = vpop.xlane.xlu0 %26 }
  0x96   :  { %v28_v11 = vmax.f32 %v24_v9, %v27_v10 }
  0x98   :  { %29 = vst.msk [vmem:[#allocation3] sm:$0xff] %vm12_vm0, %v28_v11 }
  0x9b   :  { %v33_v12 = vld [vmem:[#allocation2] sm:$0xff] }
  0x9c   :  { %v34_v13 = vmul.f32 0.00390625, %v33_v12 }
  0x9f   :  { %v35_v14 = vld [vmem:[#allocation3] sm:$0xff] }
  0xa0   :  { %v36_v15 = vadd.f32 %v35_v14, %v34_v13 }
  0xa2   :  { %v37_v16 = vmul.f32 0.5, %v36_v15 }
  0xa4   :  { %38 = vst.msk [vmem:[%s72_s1] sm:$0xff] %vm12_vm0, %v37_v16 }

</bundles_post_ra>
